<compile_context>
chip_gen: v6e
topology: v6e:2x2x1
jax: 0.10.0
libtpu: 0.0.40
codegen_flags: <defaults>
</compile_context>

<pallas_src>
import functools
import math

import jax
import jax.numpy as jnp
from jax.experimental import pallas as pl
from jax.experimental.pallas import tpu as pltpu

P_POWER = 10.0
P_NOISE = 6.2946e-14
LOG2 = math.log(2.0)

LANE = 128                    # vreg lane width
MAX_GRAPHS_PER_STEP = 8192    # graphs per grid step (multiple of 128)


def my_loss_kernel(h_ref, py_ref, out_ref, *, num_graphs):
    """One grid step processes GB graphs, graph axis lane-dense (last dim).

    h_ref:   (L, L, GB)  raw H, layout (j, k, g):  h_ref[j, k, g] = H[g, k, j]
    py_ref:  (L, GB)     prob[:, 1] * P, layout (j, g)
    out_ref: (1, GB)     per-graph contribution 1 / sum_k R[k] (0 on pad lanes)
    """
    L = h_ref.shape[0]
    GB = out_ref.shape[1]

    row_ids = jax.lax.broadcasted_iota(jnp.int32, (L, GB), 0)   # k index
    acc = jnp.zeros((L, GB), jnp.float32)                       # sum_all[k, g]
    sig = jnp.zeros((L, GB), jnp.float32)                       # H2[k,k]*Py[k]

    # Unrolled reduction over j on the VPU (VALU) — no cross-sublane reduce.
    for j in range(L):                       # static, fully unrolled (L == 8)
        hj = h_ref[j]                        # (L, GB)  H[g, k, j] over k, g
        h2j = hj * hj                        # fused elementwise square
        pyj = py_ref[pl.ds(j, 1), :]         # (1, GB)  Py row j, bcast over k
        term = h2j * pyj                     # (L, GB)  H2[k,j]*Py[j]
        acc = acc + term
        # Row k == j of `term` is H2[j,j]*Py[j] == the diagonal entry for k=j.
        sig = jnp.where(row_ids == j, term, sig)

    interference = acc - sig                 # sum_ij (same op order as ref)
    # R[k] = ln(1 + sig / (sum_ij + noise)) / ln(2); stay in ln-domain here.
    r_ln = jnp.log(1.0 + sig / (interference + P_NOISE))        # (L, GB)
    sum_r_ln = jnp.sum(r_ln, axis=0, keepdims=True)             # (1, GB) tiny

    # 1 / sum_k R[k] == ln(2) / sum_k ln(1 + ...); exact divide.
    lane = (pl.program_id(0) * GB
            + jax.lax.broadcasted_iota(jnp.int32, (1, GB), 1))
    out_ref[...] = jnp.where(lane < num_graphs, LOG2 / sum_r_ln, 0.0)


def my_loss(H_all, prob):
    """H_all: (G, L, L) f32, prob: (G*L, C) f32 -> scalar f32 loss."""
    G, L, _ = H_all.shape
    H_all = H_all.astype(jnp.float32)

    # ---- choose graphs-per-step -------------------------------------------
    n_groups = pl.cdiv(G, LANE)                        # 128-graph lane groups
    max_groups = MAX_GRAPHS_PER_STEP // LANE
    # Keep >= 2 grid steps whenever possible so v7x dual-TC parallel sharding
    # has work for both cores; otherwise one big step.
    min_steps = 2 if n_groups >= 2 else 1
    steps = max(min_steps, pl.cdiv(n_groups, max_groups))
    GB = pl.cdiv(n_groups, steps) * LANE               # graphs per step
    GP = steps * GB                                    # padded total graphs
    pad = GP - G

    # ---- wrapper-side layout only (no squaring / no diag precompute) ------
    Py = prob[:, 1].astype(jnp.float32).reshape(G, L) * P_POWER   # (G, L)
    HT = jnp.transpose(H_all, (2, 1, 0))               # (j, k, g) lane-dense
    PyT = Py.T                                         # (j, g)
    if pad:
        HT = jnp.pad(HT, ((0, 0), (0, 0), (0, pad)))   # (L, L, GP)
        PyT = jnp.pad(PyT, ((0, 0), (0, pad)))         # (L, GP)

    cost = pl.CostEstimate(
        flops=int(G * L * (2 * L + 10)),
        transcendentals=int(G * L),
        bytes_accessed=int(GP * (L * L + L + 1) * 4),
    )

    contrib = pl.pallas_call(
        functools.partial(my_loss_kernel, num_graphs=G),
        out_shape=jax.ShapeDtypeStruct((1, GP), jnp.float32),
        grid_spec=pltpu.PrefetchScalarGridSpec(
            num_scalar_prefetch=0,
            grid=(steps,),
            in_specs=[
                pl.BlockSpec((L, L, GB), lambda g: (0, 0, g)),
                pl.BlockSpec((L, GB), lambda g: (0, g)),
            ],
            out_specs=pl.BlockSpec((1, GB), lambda g: (0, g)),
        ),
        compiler_params=pltpu.CompilerParams(
            dimension_semantics=("parallel",)),
        cost_estimate=cost,
    )(HT, PyT)

    # Padded lanes are 0 in-kernel, so a plain full sum is exact.
    return jnp.sum(contrib) * (1.0 / G)


def ref_loss(H_all, prob):
    """Pure-JAX reference mirroring the PyTorch loops."""
    G, L, _ = H_all.shape
    loss = jnp.float32(0.0)
    for i in range(G):
        H2 = H_all[i] * H_all[i]
        y1 = prob[L * i:L * (i + 1), 1]
        Py = y1 * P_POWER
        sum_all = H2 @ Py
        sig = jnp.diag(H2) * Py
        sum_ij = sum_all - sig
        R = jnp.log(1.0 + sig / (sum_ij + P_NOISE)) / math.log(2.0)
        loss = loss + 1.0 / jnp.sum(R)
    return loss / G


if __name__ == "__main__":
    G = 2          # number of graphs in the batch
    L = 8          # cmd_args.link_num
    C = 2          # prob columns (column 1 is used)

    key = jax.random.PRNGKey(0)
    k_h, k_p = jax.random.split(key)

    # deterministic synthetic channel matrices (stand-in for channel_%d.txt)
    H_all = jax.random.uniform(k_h, (G, L, L), dtype=jnp.float32,
                               minval=0.1, maxval=1.0)
    # deterministic synthetic probabilities (rows sum to 1 like softmax output)
    prob = jax.nn.softmax(
        jax.random.normal(k_p, (G * L, C), dtype=jnp.float32), axis=1)

    loss = jax.block_until_ready(my_loss(H_all, prob))
    ref = jax.block_until_ready(ref_loss(H_all, prob))

    assert jnp.isfinite(loss), "kernel produced non-finite loss"
    assert jnp.allclose(loss, ref, rtol=1e-3, atol=1e-5), (loss, ref)
    print("KERNEL_OK")
</pallas_src>

<mosaic_0001>
module attributes {stable_mosaic.version = 11 : i64} {
  func.func @my_loss_kernel(%arg0: i32, %arg1: memref<8x8x128xf32, #tpu.memory_space<vmem>>, %arg2: memref<8x128xf32, #tpu.memory_space<vmem>>, %arg3: memref<1x128xf32, #tpu.memory_space<vmem>>) attributes {dimension_semantics = [#tpu.dimension_semantics<parallel>], iteration_bounds = array<i64: 1>, scalar_prefetch = 0 : i64, scratch_operands = 0 : i64, tpu.core_type = #tpu.core_type<tc>, window_params = [{transform_indices = @transform_0, window_bounds = array<i64: 8, 8, 128>}, {transform_indices = @transform_1, window_bounds = array<i64: 8, 128>}, {transform_indices = @transform_2, window_bounds = array<i64: 1, 128>}]} {
    %0 = tpu.iota {dimensions = array<i32: 0>} : vector<8x128xi32>
    %cst = arith.constant 0.000000e+00 : f32
    %1 = vector.broadcast %cst : f32 to vector<8x128xf32>
    %cst_0 = arith.constant 0.000000e+00 : f32
    %2 = vector.broadcast %cst_0 : f32 to vector<8x128xf32>
    %c0 = arith.constant 0 : index
    %c0_1 = arith.constant 0 : index
    %c0_2 = arith.constant 0 : index
    %3 = vector.load %arg1[%c0, %c0_1, %c0_2] : memref<8x8x128xf32, #tpu.memory_space<vmem>>, vector<1x8x128xf32>
    %4 = vector.shape_cast %3 : vector<1x8x128xf32> to vector<8x128xf32>
    %5 = arith.mulf %4, %4 : vector<8x128xf32>
    %c0_3 = arith.constant 0 : index
    %c0_4 = arith.constant 0 : index
    %6 = vector.load %arg2[%c0_3, %c0_4] : memref<8x128xf32, #tpu.memory_space<vmem>>, vector<1x128xf32>
    %7 = vector.broadcast %6 : vector<1x128xf32> to vector<8x128xf32>
    %8 = arith.mulf %5, %7 : vector<8x128xf32>
    %9 = arith.addf %1, %8 : vector<8x128xf32>
    %c0_i32 = arith.constant 0 : i32
    %10 = vector.broadcast %c0_i32 : i32 to vector<8x128xi32>
    %11 = arith.cmpi eq, %0, %10 : vector<8x128xi32>
    %12 = arith.select %11, %8, %2 : vector<8x128xi1>, vector<8x128xf32>
    %c1 = arith.constant 1 : index
    %c0_5 = arith.constant 0 : index
    %c0_6 = arith.constant 0 : index
    %13 = vector.load %arg1[%c1, %c0_5, %c0_6] : memref<8x8x128xf32, #tpu.memory_space<vmem>>, vector<1x8x128xf32>
    %14 = vector.shape_cast %13 : vector<1x8x128xf32> to vector<8x128xf32>
    %15 = arith.mulf %14, %14 : vector<8x128xf32>
    %c1_7 = arith.constant 1 : index
    %c0_8 = arith.constant 0 : index
    %16 = vector.load %arg2[%c1_7, %c0_8] : memref<8x128xf32, #tpu.memory_space<vmem>>, vector<1x128xf32>
    %17 = vector.broadcast %16 : vector<1x128xf32> to vector<8x128xf32>
    %18 = arith.mulf %15, %17 : vector<8x128xf32>
    %19 = arith.addf %9, %18 : vector<8x128xf32>
    %c1_i32 = arith.constant 1 : i32
    %20 = vector.broadcast %c1_i32 : i32 to vector<8x128xi32>
    %21 = arith.cmpi eq, %0, %20 : vector<8x128xi32>
    %22 = arith.select %21, %18, %12 : vector<8x128xi1>, vector<8x128xf32>
    %c2 = arith.constant 2 : index
    %c0_9 = arith.constant 0 : index
    %c0_10 = arith.constant 0 : index
    %23 = vector.load %arg1[%c2, %c0_9, %c0_10] : memref<8x8x128xf32, #tpu.memory_space<vmem>>, vector<1x8x128xf32>
    %24 = vector.shape_cast %23 : vector<1x8x128xf32> to vector<8x128xf32>
    %25 = arith.mulf %24, %24 : vector<8x128xf32>
    %c2_11 = arith.constant 2 : index
    %c0_12 = arith.constant 0 : index
    %26 = vector.load %arg2[%c2_11, %c0_12] : memref<8x128xf32, #tpu.memory_space<vmem>>, vector<1x128xf32>
    %27 = vector.broadcast %26 : vector<1x128xf32> to vector<8x128xf32>
    %28 = arith.mulf %25, %27 : vector<8x128xf32>
    %29 = arith.addf %19, %28 : vector<8x128xf32>
    %c2_i32 = arith.constant 2 : i32
    %30 = vector.broadcast %c2_i32 : i32 to vector<8x128xi32>
    %31 = arith.cmpi eq, %0, %30 : vector<8x128xi32>
    %32 = arith.select %31, %28, %22 : vector<8x128xi1>, vector<8x128xf32>
    %c3 = arith.constant 3 : index
    %c0_13 = arith.constant 0 : index
    %c0_14 = arith.constant 0 : index
    %33 = vector.load %arg1[%c3, %c0_13, %c0_14] : memref<8x8x128xf32, #tpu.memory_space<vmem>>, vector<1x8x128xf32>
    %34 = vector.shape_cast %33 : vector<1x8x128xf32> to vector<8x128xf32>
    %35 = arith.mulf %34, %34 : vector<8x128xf32>
    %c3_15 = arith.constant 3 : index
    %c0_16 = arith.constant 0 : index
    %36 = vector.load %arg2[%c3_15, %c0_16] : memref<8x128xf32, #tpu.memory_space<vmem>>, vector<1x128xf32>
    %37 = vector.broadcast %36 : vector<1x128xf32> to vector<8x128xf32>
    %38 = arith.mulf %35, %37 : vector<8x128xf32>
    %39 = arith.addf %29, %38 : vector<8x128xf32>
    %c3_i32 = arith.constant 3 : i32
    %40 = vector.broadcast %c3_i32 : i32 to vector<8x128xi32>
    %41 = arith.cmpi eq, %0, %40 : vector<8x128xi32>
    %42 = arith.select %41, %38, %32 : vector<8x128xi1>, vector<8x128xf32>
    %c4 = arith.constant 4 : index
    %c0_17 = arith.constant 0 : index
    %c0_18 = arith.constant 0 : index
    %43 = vector.load %arg1[%c4, %c0_17, %c0_18] : memref<8x8x128xf32, #tpu.memory_space<vmem>>, vector<1x8x128xf32>
    %44 = vector.shape_cast %43 : vector<1x8x128xf32> to vector<8x128xf32>
    %45 = arith.mulf %44, %44 : vector<8x128xf32>
    %c4_19 = arith.constant 4 : index
    %c0_20 = arith.constant 0 : index
    %46 = vector.load %arg2[%c4_19, %c0_20] : memref<8x128xf32, #tpu.memory_space<vmem>>, vector<1x128xf32>
    %47 = vector.broadcast %46 : vector<1x128xf32> to vector<8x128xf32>
    %48 = arith.mulf %45, %47 : vector<8x128xf32>
    %49 = arith.addf %39, %48 : vector<8x128xf32>
    %c4_i32 = arith.constant 4 : i32
    %50 = vector.broadcast %c4_i32 : i32 to vector<8x128xi32>
    %51 = arith.cmpi eq, %0, %50 : vector<8x128xi32>
    %52 = arith.select %51, %48, %42 : vector<8x128xi1>, vector<8x128xf32>
    %c5 = arith.constant 5 : index
    %c0_21 = arith.constant 0 : index
    %c0_22 = arith.constant 0 : index
    %53 = vector.load %arg1[%c5, %c0_21, %c0_22] : memref<8x8x128xf32, #tpu.memory_space<vmem>>, vector<1x8x128xf32>
    %54 = vector.shape_cast %53 : vector<1x8x128xf32> to vector<8x128xf32>
    %55 = arith.mulf %54, %54 : vector<8x128xf32>
    %c5_23 = arith.constant 5 : index
    %c0_24 = arith.constant 0 : index
    %56 = vector.load %arg2[%c5_23, %c0_24] : memref<8x128xf32, #tpu.memory_space<vmem>>, vector<1x128xf32>
    %57 = vector.broadcast %56 : vector<1x128xf32> to vector<8x128xf32>
    %58 = arith.mulf %55, %57 : vector<8x128xf32>
    %59 = arith.addf %49, %58 : vector<8x128xf32>
    %c5_i32 = arith.constant 5 : i32
    %60 = vector.broadcast %c5_i32 : i32 to vector<8x128xi32>
    %61 = arith.cmpi eq, %0, %60 : vector<8x128xi32>
    %62 = arith.select %61, %58, %52 : vector<8x128xi1>, vector<8x128xf32>
    %c6 = arith.constant 6 : index
    %c0_25 = arith.constant 0 : index
    %c0_26 = arith.constant 0 : index
    %63 = vector.load %arg1[%c6, %c0_25, %c0_26] : memref<8x8x128xf32, #tpu.memory_space<vmem>>, vector<1x8x128xf32>
    %64 = vector.shape_cast %63 : vector<1x8x128xf32> to vector<8x128xf32>
    %65 = arith.mulf %64, %64 : vector<8x128xf32>
    %c6_27 = arith.constant 6 : index
    %c0_28 = arith.constant 0 : index
    %66 = vector.load %arg2[%c6_27, %c0_28] : memref<8x128xf32, #tpu.memory_space<vmem>>, vector<1x128xf32>
    %67 = vector.broadcast %66 : vector<1x128xf32> to vector<8x128xf32>
    %68 = arith.mulf %65, %67 : vector<8x128xf32>
    %69 = arith.addf %59, %68 : vector<8x128xf32>
    %c6_i32 = arith.constant 6 : i32
    %70 = vector.broadcast %c6_i32 : i32 to vector<8x128xi32>
    %71 = arith.cmpi eq, %0, %70 : vector<8x128xi32>
    %72 = arith.select %71, %68, %62 : vector<8x128xi1>, vector<8x128xf32>
    %c7 = arith.constant 7 : index
    %c0_29 = arith.constant 0 : index
    %c0_30 = arith.constant 0 : index
    %73 = vector.load %arg1[%c7, %c0_29, %c0_30] : memref<8x8x128xf32, #tpu.memory_space<vmem>>, vector<1x8x128xf32>
    %74 = vector.shape_cast %73 : vector<1x8x128xf32> to vector<8x128xf32>
    %75 = arith.mulf %74, %74 : vector<8x128xf32>
    %c7_31 = arith.constant 7 : index
    %c0_32 = arith.constant 0 : index
    %76 = vector.load %arg2[%c7_31, %c0_32] : memref<8x128xf32, #tpu.memory_space<vmem>>, vector<1x128xf32>
    %77 = vector.broadcast %76 : vector<1x128xf32> to vector<8x128xf32>
    %78 = arith.mulf %75, %77 : vector<8x128xf32>
    %79 = arith.addf %69, %78 : vector<8x128xf32>
    %c7_i32 = arith.constant 7 : i32
    %80 = vector.broadcast %c7_i32 : i32 to vector<8x128xi32>
    %81 = arith.cmpi eq, %0, %80 : vector<8x128xi32>
    %82 = arith.select %81, %78, %72 : vector<8x128xi1>, vector<8x128xf32>
    %83 = arith.subf %79, %82 : vector<8x128xf32>
    %cst_33 = arith.constant 6.294600e-14 : f32
    %84 = vector.broadcast %cst_33 : f32 to vector<8x128xf32>
    %85 = arith.addf %83, %84 : vector<8x128xf32>
    %86 = arith.divf %82, %85 : vector<8x128xf32>
    %cst_34 = arith.constant 1.000000e+00 : f32
    %87 = vector.broadcast %cst_34 : f32 to vector<8x128xf32>
    %88 = arith.addf %87, %86 : vector<8x128xf32>
    %89 = math.log %88 : vector<8x128xf32>
    %cst_35 = arith.constant dense<0.000000e+00> : vector<128xf32>
    %90 = vector.multi_reduction <add>, %89, %cst_35 [0] : vector<8x128xf32> to vector<128xf32>
    %91 = vector.shape_cast %90 : vector<128xf32> to vector<1x128xf32>
    %c128_i32 = arith.constant 128 : i32
    %92 = arith.muli %arg0, %c128_i32 : i32
    %93 = tpu.iota {dimensions = array<i32: 1>} : vector<1x128xi32>
    %94 = vector.broadcast %92 : i32 to vector<1x128xi32>
    %95 = arith.addi %94, %93 : vector<1x128xi32>
    %c2_i32_36 = arith.constant 2 : i32
    %96 = vector.broadcast %c2_i32_36 : i32 to vector<1x128xi32>
    %97 = arith.cmpi slt, %95, %96 : vector<1x128xi32>
    %cst_37 = arith.constant 0.693147182 : f32
    %98 = vector.broadcast %cst_37 : f32 to vector<1x128xf32>
    %99 = arith.divf %98, %91 : vector<1x128xf32>
    %cst_38 = arith.constant 0.000000e+00 : f32
    %100 = vector.broadcast %cst_38 : f32 to vector<1x128xf32>
    %101 = arith.select %97, %99, %100 : vector<1x128xi1>, vector<1x128xf32>
    %c0_39 = arith.constant 0 : index
    %c0_40 = arith.constant 0 : index
    %102 = vector.load %arg3[%c0_39, %c0_40] : memref<1x128xf32, #tpu.memory_space<vmem>>, vector<1x128xf32>
    tpu.vector_store %arg3[%c0_39, %c0_40], %101 {strides = array<i32>} : memref<1x128xf32, #tpu.memory_space<vmem>>, vector<1x128xf32>,
    return
  }
  func.func @transform_0(%arg0: i32) -> (i32, i32, i32) {
    %c0_i32 = arith.constant 0 : i32
    %c0_i32_0 = arith.constant 0 : i32
    %c0_i32_1 = arith.constant 0 : i32
    return %c0_i32, %c0_i32_0, %arg0 : i32, i32, i32
  }
  func.func @transform_1(%arg0: i32) -> (i32, i32) {
    %c0_i32 = arith.constant 0 : i32
    %c0_i32_0 = arith.constant 0 : i32
    return %c0_i32, %arg0 : i32, i32
  }
  func.func @transform_2(%arg0: i32) -> (i32, i32) {
    %c0_i32 = arith.constant 0 : i32
    %c0_i32_0 = arith.constant 0 : i32
    return %c0_i32, %arg0 : i32, i32
  }
}

</mosaic_0001>

<bundles_post_ra>
// kernel: tpu_custom_call.1
= control target key start
LH: loop header
LB: loop body
LE: loop exit
PB: predicated region body
PF: predicated region fallthrough
CT: control target
= control target key end

     0   :  { %7 = vsyncpa [#allocation3], 0  ;;  %s292_s0 = inlined_call_operand.hbm [shape: f32[8,8,128], index: 0, kind: input, shape index: {}]   ;;  %s293_s1 = inlined_call_operand.hbm [shape: f32[8,128], index: 1, kind: input, shape index: {}]   ;;  %s294_s2 = inlined_call_operand.hbm [shape: f32[1,128], index: 2, kind: output, shape index: {}]  }
   0x1   :  { %8 = vsyncpa [#allocation6], 0 }
   0x2   :  { %9 = vsyncpa [#allocation4], 0  ;;  %s259_s9 = smov [#allocation2]  }
   0x3   :  { %s15_s10 = sshll.u32 %s259_s9, 4  ;;  %s16_s10 = int_to_ptr.vmem [resolvable:$true] %s15_s10 }
   0x4   :  { %s201_s11 = scalar_lea.vmem %s16_s10, 1024  ;;  %p206_p1 = scmp.lt.s32.totalorder %s16_s10, %s16_s10 }
   0x5   :  { %p202_p0 = scmp.ne.s32.totalorder %s16_s10, %s201_s11  ;;  %p207_p2 = scmp.lt.s32.totalorder %s201_s11, %s201_s11 }
   0x7   :  { %p208_p3 = por %p207_p2, %p206_p1 }
   0x9   :  { %p209_p4 = pnand %p208_p3, %p202_p0 }
   0xb   :  { %212 = shalt.err (!%p209_p4)
}
   0xc   :  { %s260_s12 = smov 128   ;;  %s261_s13 = smov 8  }
   0xd   :  { %21 = dma.hbm_to_vmem [thread:$0]  %s292_s0, 1024, %s16_s10, [#allocation3], %s260_s12, %s260_s12, %s261_s13  }
   0xe   :  { %s262_s16 = smov [#allocation5]  }
   0xf   :  { %s28_s17 = sshll.u32 %s262_s16, 4  ;;  %s29_s17 = int_to_ptr.vmem [resolvable:$true] %s28_s17 }
  0x10   :  { %s221_s18 = scalar_lea.vmem %s29_s17, 128  ;;  %p226_p6 = scmp.lt.s32.totalorder %s29_s17, %s29_s17 }
  0x11   :  { %p222_p5 = scmp.ne.s32.totalorder %s29_s17, %s221_s18  ;;  %p227_p7 = scmp.lt.s32.totalorder %s221_s18, %s221_s18 }
  0x13   :  { %p228_p8 = por %p227_p7, %p226_p6 }
  0x15   :  { %p229_p9 = pnand %p228_p8, %p222_p5 }
  0x17   :  { %232 = shalt.err (!%p229_p9)
}
  0x18   :  { %31 = dma.hbm_to_vmem [thread:$0]  %s293_s1, 128, %s29_s17, [#allocation6]  }
  0x19   :  { %253 = dma.done.wait [#allocation3], 1024  }
  0x1a   :  { %254 = vsyncadd [#allocation3], 4294966272 }
  0x1b   :  { %255 = dma.done.wait [#allocation6], 128  }
  0x1c   :  { %256 = vsyncadd [#allocation6], 4294967168  ;;  %v38_v0 = vlaneseq  ;;  %v40_v2 = vld [vmem:[#allocation2] sm:$0xff]  ;;  %v52_v4 = vld [vmem:[#allocation2 + $0x8] sm:$0xff]  ;;  %s263_s0 = smov [#allocation7]  }
  0x1d   :  { %v174_v3 = vld [vmem:[#allocation5] ss:$0 sm:$0xff]  ;;  %v41_v5 = vmul.f32 %v40_v2, %v40_v2  ;;  %v53_v6 = vmul.f32 %v52_v4, %v52_v4  ;;  %v175_v7 = vld [vmem:[#allocation5 + $0x1] ss:$0 sm:$0xff]  ;;  %v64_v8 = vld [vmem:[#allocation2 + $0x10] sm:$0xff]  ;;  %s164_s1 = sshll.u32 %s263_s0, 4  ;;  %s165_s1 = int_to_ptr.vmem [resolvable:$true] %s164_s1 }
  0x1e   :  { %v39_v1 = vshrl.u32 %v38_v0, 7  ;;  %v176_v9 = vld [vmem:[#allocation5 + $0x2] ss:$0 sm:$0xff]  ;;  %v65_v10 = vmul.f32 %v64_v8, %v64_v8  ;;  %v76_v11 = vld [vmem:[#allocation2 + $0x18] sm:$0xff]  ;;  %v177_v12 = vld [vmem:[#allocation5 + $0x3] ss:$0 sm:$0xff]  ;;  %p238_p11 = scmp.lt.s32.totalorder %s165_s1, %s165_s1 }
  0x1f   :  { %v88_v13 = vld [vmem:[#allocation2 + $0x20] sm:$0xff]  ;;  %v47_v14 = vmul.f32 %v174_v3, %v41_v5  ;;  %v59_v15 = vmul.f32 %v175_v7, %v53_v6  ;;  %v77_v16 = vmul.f32 %v76_v11, %v76_v11  ;;  %v100_v18 = vld [vmem:[#allocation2 + $0x28] sm:$0xff]  ;;  %v112_v22 = vld [vmem:[#allocation2 + $0x30] sm:$0xff]  ;;  %v150_v62 = vand.u32 127, %v38_v0  ;;  %s233_s21 = scalar_lea.vmem %s165_s1, 16  ;;  %s237_s22 = scalar_lea.vmem %s165_s1, 32 }
  0x20   :  { %vm49_vm0 = vcmp.eq.s32.totalorder %v39_v1, 0  ;;  %vm61_vm1 = vcmp.eq.s32.totalorder %v39_v1, 1  ;;  %v89_v17 = vmul.f32 %v88_v13, %v88_v13  ;;  %v71_v19 = vmul.f32 %v176_v9, %v65_v10  ;;  %v178_v20 = vld [vmem:[#allocation5 + $0x4] ss:$0 sm:$0xff]  ;;  %v179_v26 = vld [vmem:[#allocation5 + $0x5] ss:$0 sm:$0xff]  ;;  %p234_p10 = scmp.ne.s32.totalorder %s165_s1, %s233_s21  ;;  %p239_p12 = scmp.lt.s32.totalorder %s237_s22, %s233_s21 }
  0x21   :  { %vm73_vm2 = vcmp.eq.s32.totalorder %v39_v1, 2  ;;  %v101_v21 = vmul.f32 %v100_v18, %v100_v18  ;;  %v50_v23 = vsel %vm49_vm0, %v47_v14, 0.0  ;;  %v60_v24 = vadd.f32 %v59_v15, %v47_v14  ;;  %v124_v27 = vld [vmem:[#allocation2 + $0x38] sm:$0xff]  ;;  %v180_v35 = vld [vmem:[#allocation5 + $0x6] ss:$0 sm:$0xff] }
  0x22   :  { %v83_v25 = vmul.f32 %v177_v12, %v77_v16  ;;  %vm85_vm3 = vcmp.eq.s32.totalorder %v39_v1, 3  ;;  %v62_v28 = vsel %vm61_vm1, %v59_v15, %v50_v23  ;;  %vm97_vm4 = vcmp.eq.s32.totalorder %v39_v1, 4  ;;  %v181_v39 = vld [vmem:[#allocation5 + $0x7] ss:$0 sm:$0xff]  ;;  %p240_p13 = por %p239_p12, %p238_p11 }
  0x23   :  { %vm109_vm5 = vcmp.eq.s32.totalorder %v39_v1, 5  ;;  %v72_v29 = vadd.f32 %v71_v19, %v60_v24  ;;  %v74_v30 = vsel %vm73_vm2, %v71_v19, %v62_v28  ;;  %v95_v31 = vmul.f32 %v178_v20, %v89_v17 }
  0x24   :  { %v113_v32 = vmul.f32 %v112_v22, %v112_v22  ;;  %v86_v33 = vsel %vm85_vm3, %v83_v25, %v74_v30  ;;  %v107_v34 = vmul.f32 %v179_v26, %v101_v21  ;;  %v125_v36 = vmul.f32 %v124_v27, %v124_v27  ;;  %p241_p0 = pnand %p240_p13, %p234_p10 }
  0x25   :  { %v84_v37 = vadd.f32 %v83_v25, %v72_v29  ;;  %v98_v38 = vsel %vm97_vm4, %v95_v31, %v86_v33  ;;  %vm121_vm6 = vcmp.eq.s32.totalorder %v39_v1, 6  ;;  %vm133_vm7 = vcmp.eq.s32.totalorder %v39_v1, 7 }
  0x26   :  { %v110_v40 = vsel %vm109_vm5, %v107_v34, %v98_v38  ;;  %v119_v42 = vmul.f32 %v180_v35, %v113_v32  ;;  %v131_v43 = vmul.f32 %v181_v39, %v125_v36  ;;  %vm153_vm8 = vcmp.lt.s32.totalorder %v150_v62, 2 }
  0x27   :  { %v96_v41 = vadd.f32 %v95_v31, %v84_v37 }
  0x28   :  { %v122_v45 = vsel %vm121_vm6, %v119_v42, %v110_v40 }
  0x29   :  { %v108_v44 = vadd.f32 %v107_v34, %v96_v41  ;;  %v134_v47 = vsel %vm133_vm7, %v131_v43, %v122_v45 }
  0x2b   :  { %v120_v46 = vadd.f32 %v119_v42, %v108_v44 }
  0x2d   :  { %v132_v48 = vadd.f32 %v131_v43, %v120_v46 }
  0x2f   :  { %v135_v49 = vsub.f32 %v132_v48, %v134_v47 }
  0x31   :  { %v136_v50 = vadd.f32 6.2946e-14, %v135_v49 }
  0x33   :  { %187 = vrcp.f32 %v136_v50 }
  0x40   :  { %v188_v51 = vpop.eup %187 }
  0x41   :  { %v138_v52 = vmul.f32 %v188_v51, %v134_v47 }
  0x43   :  { %v139_v53 = vadd.f32 1.0, %v138_v52 }
  0x45   :  { %189 = vlog2.f32 %v139_v53 }
  0x52   :  { %v190_v54 = vpop.eup %189 }
  0x53   :  { %v141_v55 = vmul.f32 0.6931472, %v190_v54 }
  0x55   :  { %v142_v56 = vrot.slane %v141_v55, 4 }
  0x57   :  { %v143_v57 = vadd.f32 %v142_v56, %v141_v55 }
  0x59   :  { %v144_v58 = vrot.slane %v143_v57, 2 }
  0x5b   :  { %v145_v59 = vadd.f32 %v144_v58, %v143_v57 }
  0x5d   :  { %v146_v60 = vrot.slane %v145_v59, 1 }
  0x5f   :  { %v147_v61 = vadd.f32 %v146_v60, %v145_v59 }
  0x61   :  { %191 = vrcp.f32 %v147_v61 }
  0x6e   :  { %v192_v63 = vpop.eup %191 }
  0x6f   :  { %v155_v1 = vmul.f32 0.6931472, %v192_v63 }
  0x71   :  { %v156_v2 = vsel %vm153_vm8, %v155_v1, 0.0 }
  0x72   :  { %157 = vst [vmem:[#allocation7] sm:$0x1] %v156_v2 }
  0x73   :  { %244 = shalt.err (!%p241_p0)
}
  0x74   :  { %167 = dma.vmem_to_hbm [thread:$0]  %s165_s1, 16, %s294_s2, [#allocation4]  }
  0x75   :  { %257 = dma.done.wait [#allocation4], 16  }
  0x76   :  { %258 = vsyncadd [#allocation4], 4294967280 }
  0x77   :  { %171 = vsyncpa [#allocation3], 1 }
  0x78   :  { %172 = vsyncpa [#allocation6], 1 }
  0x79   :  { %173 = vsyncpa [#allocation4], 1 }

</bundles_post_ra>
